<compile_context>
chip_gen: v7x
topology: tpu7x:2x2x1
jax: 0.10.0
libtpu: 0.0.40
codegen_flags: <defaults>
</compile_context>

<pallas_src>
import functools

import jax
import jax.numpy as jnp
from jax.experimental import pallas as pl
from jax.experimental.pallas import tpu as pltpu


# ---------------------------------------------------------------------------
# Pallas kernel: expand(1x1) -> ReLU6 -> depthwise(1,3) -> ReLU6 -> project(1x1)
# (optional residual add).  One grid step processes one full image n.
# Activations are laid out (C, H*W): channels on sublanes, spatial on lanes.
# ---------------------------------------------------------------------------
def _inverted_residual_kernel(x_ref, w1_ref, b1_ref, wdw_ref, bdw_ref,
                              w3_ref, b3_ref, o_ref, *,
                              width, stride_w, use_res, has_expand):
    x = x_ref[0]                                   # (Cin, H*W) fp32, lane-dense

    # ---- 1x1 expansion conv (+ folded BN) + ReLU6: single MXU matmul.
    if has_expand:
        t = jnp.dot(w1_ref[...], x, preferred_element_type=jnp.float32)
        t = jnp.clip(t + b1_ref[...], 0.0, 6.0)    # (Hd, H*W)
    else:
        t = x

    hd, hw = t.shape

    # ---- depthwise (1,3) conv along W, zero padding 1.
    # Neighbours along W are fetched with XLU lane rotations.  Row boundaries
    # (and the circular wrap of the rotation) are masked by comparing the
    # rotated w-index with the expected neighbour index; this also makes the
    # code independent of the rotation's sign convention (requires W >= 3).
    w_pos = jax.lax.broadcasted_iota(jnp.int32, (hd, hw), 1) % width
    t_a = pltpu.roll(t, 1, axis=1)
    p_a = pltpu.roll(w_pos, 1, axis=1)
    t_b = pltpu.roll(t, hw - 1, axis=1)            # rotate by -1 (mod hw)
    p_b = pltpu.roll(w_pos, hw - 1, axis=1)

    left = (jnp.where(p_a == w_pos - 1, t_a, 0.0)
            + jnp.where(p_b == w_pos - 1, t_b, 0.0))
    right = (jnp.where(p_a == w_pos + 1, t_a, 0.0)
             + jnp.where(p_b == w_pos + 1, t_b, 0.0))

    dw = (left * wdw_ref[:, 0:1]
          + t * wdw_ref[:, 1:2]
          + right * wdw_ref[:, 2:3]) + bdw_ref[...]
    dw = jnp.clip(dw, 0.0, 6.0)                    # (Hd, H*W)

    if stride_w == 2:
        # Dense stride-1 compute above, one strided downsample here.
        dw = dw[:, ::2]                            # (Hd, H*Wout); W must be even
        # TODO(synk): odd W with stride 2 needs a per-row downsample instead.

    # ---- 1x1 projection conv (+ folded BN), no activation.
    y = jnp.dot(w3_ref[...], dw, preferred_element_type=jnp.float32)
    y = y + b3_ref[...]                            # (Cout, H*Wout)

    # ---- residual connection
    if use_res:
        y = y + x

    o_ref[0] = y.astype(o_ref.dtype)


def inverted_residual_pallas(x_nchw, params, *, stride_w, use_res, has_expand):
    """x_nchw: (N, Cin, H, W) float32.  Returns (N, Cout, H, Wout) in NCHW."""
    n, c_in, h, w = x_nchw.shape
    w1, b1, wdw, bdw, w3, b3 = params
    hd = wdw.shape[0]
    c_out = w3.shape[0]
    w_out = (w + 2 - 3) // stride_w + 1
    hw = h * w

    assert stride_w in (1, 2)
    assert w >= 3, "depthwise (1,3) roll path assumes W >= 3"
    if stride_w == 2:
        assert w % 2 == 0, "stride-2 fast path assumes even W"
    # TODO(synk): the module allows stride_h != 1; this wrapper assumes
    # stride_h == 1 (the (1,3) kernel does not mix rows, so stride_h would be
    # a plain row subsample done once on the output).

    # Free contiguous reshape: NCHW -> (N, C, H*W).  No HBM transpose.
    x = x_nchw.reshape(n, c_in, hw)

    kernel = functools.partial(
        _inverted_residual_kernel,
        width=w, stride_w=stride_w, use_res=use_res, has_expand=has_expand)

    const = lambda shape: pl.BlockSpec(shape, lambda b: (0, 0))

    # Advisory cost estimate for XLA's scheduler.
    flops = n * ((2 * c_in * hd * hw if has_expand else 0)
                 + 8 * hd * hw                       # depthwise taps + clip
                 + 2 * hd * c_out * h * w_out)
    bytes_accessed = 4 * (n * c_in * hw + n * c_out * h * w_out
                          + hd * c_in + 3 * hd + c_out * hd + 2 * hd + c_out)

    out = pl.pallas_call(
        kernel,
        out_shape=jax.ShapeDtypeStruct((n, c_out, h * w_out), jnp.float32),
        grid_spec=pltpu.PrefetchScalarGridSpec(
            num_scalar_prefetch=0,
            grid=(n,),
            in_specs=[
                pl.BlockSpec((1, c_in, hw), lambda b: (b, 0, 0)),
                const((hd, c_in)),    # expand weight  (BN folded)
                const((hd, 1)),       # expand bias
                const((hd, 3)),       # depthwise taps (BN folded)
                const((hd, 1)),       # depthwise bias
                const((c_out, hd)),   # project weight (BN folded)
                const((c_out, 1)),    # project bias
            ],
            out_specs=pl.BlockSpec((1, c_out, h * w_out), lambda b: (b, 0, 0)),
        ),
        compiler_params=pltpu.CompilerParams(
            dimension_semantics=("parallel",)),
        cost_estimate=pl.CostEstimate(
            flops=flops, transcendentals=0, bytes_accessed=bytes_accessed),
    )(x, w1, b1, wdw, bdw, w3, b3)

    # Free contiguous reshape back: (N, Cout, H*Wout) -> NCHW.
    return out.reshape(n, c_out, h, w_out)


# ---------------------------------------------------------------------------
# Parameter construction (deterministic) + BN folding (plain-JAX glue).
# Weight layouts match PyTorch conv weights with BN folded in:
#   expand  (Hd, Cin), depthwise taps (Hd, 3), project (Cout, Hd);
#   biases as column vectors (C, 1) so they broadcast over the lane axis.
# ---------------------------------------------------------------------------
def make_params(key, inp, oup, expand_ratio, eps=1e-5):
    hd = int(round(inp * expand_ratio))
    ks = jax.random.split(key, 15)

    def bn(k0, k1, k2, k3, c):
        gamma = jax.random.uniform(k0, (c,), minval=0.5, maxval=1.5)
        beta = 0.1 * jax.random.normal(k1, (c,))
        mean = 0.1 * jax.random.normal(k2, (c,))
        var = jax.random.uniform(k3, (c,), minval=0.5, maxval=1.5)
        scale = gamma / jnp.sqrt(var + eps)
        bias = beta - mean * scale
        return scale, bias

    # expansion 1x1 conv (inp -> hd): torch weight (hd, inp, 1, 1) -> (hd, inp)
    w1 = 0.3 * jax.random.normal(ks[0], (hd, inp))
    s1, bb1 = bn(ks[1], ks[2], ks[3], ks[4], hd)
    w1f = (w1 * s1[:, None]).astype(jnp.float32)
    b1f = bb1[:, None].astype(jnp.float32)

    # depthwise (1,3) conv: torch weight (hd, 1, 1, 3) -> (hd, 3)
    wdw = 0.3 * jax.random.normal(ks[5], (hd, 3))
    s2, bb2 = bn(ks[6], ks[7], ks[8], ks[9], hd)
    wdwf = (wdw * s2[:, None]).astype(jnp.float32)
    bdwf = bb2[:, None].astype(jnp.float32)

    # projection 1x1 conv (hd -> oup): torch weight (oup, hd, 1, 1) -> (oup, hd)
    w3 = 0.3 * jax.random.normal(ks[10], (oup, hd))
    s3, bb3 = bn(ks[11], ks[12], ks[13], ks[14], oup)
    w3f = (w3 * s3[:, None]).astype(jnp.float32)
    b3f = bb3[:, None].astype(jnp.float32)

    return (w1f, b1f, wdwf, bdwf, w3f, b3f)


# ---------------------------------------------------------------------------
# Pure-JAX reference (same folded params, NCHW) for the correctness check.
# ---------------------------------------------------------------------------
def reference(x, params, *, stride_w, use_res, has_expand):
    w1, b1, wdw, bdw, w3, b3 = params
    if has_expand:
        t = jnp.einsum('dc,nchw->ndhw', w1, x, precision='highest')
        t = jnp.clip(t + b1.reshape(1, -1, 1, 1), 0.0, 6.0)
    else:
        t = x
    tp = jnp.pad(t, ((0, 0), (0, 0), (0, 0), (1, 1)))
    w_in = x.shape[3]
    w_out = (w_in + 2 - 3) // stride_w + 1
    idx = jnp.arange(w_out) * stride_w
    dw = (tp[..., idx] * wdw[:, 0].reshape(1, -1, 1, 1)
          + tp[..., idx + 1] * wdw[:, 1].reshape(1, -1, 1, 1)
          + tp[..., idx + 2] * wdw[:, 2].reshape(1, -1, 1, 1)
          + bdw.reshape(1, -1, 1, 1))
    dw = jnp.clip(dw, 0.0, 6.0)
    y = jnp.einsum('ed,ndhw->nehw', w3, dw, precision='highest')
    y = y + b3.reshape(1, -1, 1, 1)
    if use_res:
        y = y + x
    return y


if __name__ == "__main__":
    # InvertedResidual(inp=4, oup=4, stride=(1,1), expand_ratio=2)
    inp, oup = 4, 4
    stride = (1, 1)
    expand_ratio = 2
    use_res = (stride[1] == 1) and (inp == oup)
    has_expand = (expand_ratio != 1)

    key = jax.random.PRNGKey(0)
    kx, kp = jax.random.split(key)
    x = jax.random.normal(kx, (2, inp, 16, 16), dtype=jnp.float32)   # NCHW
    params = make_params(kp, inp, oup, expand_ratio)

    out = inverted_residual_pallas(
        x, params, stride_w=stride[1], use_res=use_res, has_expand=has_expand)
    out = jax.block_until_ready(out)

    ref = reference(
        x, params, stride_w=stride[1], use_res=use_res, has_expand=has_expand)
    assert out.shape == ref.shape == (2, oup, 16, 16), out.shape
    assert jnp.allclose(out, ref, atol=1e-4, rtol=1e-4), "mismatch vs reference"

    print("KERNEL_OK")
</pallas_src>

<mosaic_0001>
module attributes {stable_mosaic.version = 11 : i64} {
  func.func @_inverted_residual_kernel(%arg0: i32, %arg1: memref<1x4x256xf32, #tpu.memory_space<vmem>>, %arg2: memref<8x4xf32, #tpu.memory_space<vmem>>, %arg3: memref<8x1xf32, #tpu.memory_space<vmem>>, %arg4: memref<8x3xf32, #tpu.memory_space<vmem>>, %arg5: memref<8x1xf32, #tpu.memory_space<vmem>>, %arg6: memref<4x8xf32, #tpu.memory_space<vmem>>, %arg7: memref<4x1xf32, #tpu.memory_space<vmem>>, %arg8: memref<1x4x256xf32, #tpu.memory_space<vmem>>) attributes {dimension_semantics = [#tpu.dimension_semantics<parallel>], iteration_bounds = array<i64: 2>, scalar_prefetch = 0 : i64, scratch_operands = 0 : i64, tpu.core_type = #tpu.core_type<tc>, window_params = [{transform_indices = @transform_0, window_bounds = array<i64: 1, 4, 256>}, {pipeline_mode = #tpu.pipeline_mode<synchronous>, transform_indices = @transform_1, window_bounds = array<i64: 8, 4>}, {pipeline_mode = #tpu.pipeline_mode<synchronous>, transform_indices = @transform_2, window_bounds = array<i64: 8, 1>}, {pipeline_mode = #tpu.pipeline_mode<synchronous>, transform_indices = @transform_3, window_bounds = array<i64: 8, 3>}, {pipeline_mode = #tpu.pipeline_mode<synchronous>, transform_indices = @transform_4, window_bounds = array<i64: 8, 1>}, {pipeline_mode = #tpu.pipeline_mode<synchronous>, transform_indices = @transform_5, window_bounds = array<i64: 4, 8>}, {pipeline_mode = #tpu.pipeline_mode<synchronous>, transform_indices = @transform_6, window_bounds = array<i64: 4, 1>}, {transform_indices = @transform_7, window_bounds = array<i64: 1, 4, 256>}]} {
    %c0 = arith.constant 0 : index
    %c0_0 = arith.constant 0 : index
    %c0_1 = arith.constant 0 : index
    %0 = vector.load %arg1[%c0, %c0_0, %c0_1] : memref<1x4x256xf32, #tpu.memory_space<vmem>>, vector<1x4x256xf32>
    %1 = vector.shape_cast %0 : vector<1x4x256xf32> to vector<4x256xf32>
    %c0_2 = arith.constant 0 : index
    %c0_3 = arith.constant 0 : index
    %2 = vector.load %arg2[%c0_2, %c0_3] : memref<8x4xf32, #tpu.memory_space<vmem>>, vector<8x4xf32>
    %cst = arith.constant dense<0.000000e+00> : vector<8x256xf32>
    %3 = tpu.matmul %2, %1, %cst {dimension_numbers = #tpu.dot_dimension_numbers<[1], [0], [0], [1], [0, 0, 1, 1], [], []>} : vector<8x4xf32>, vector<4x256xf32>, vector<8x256xf32> -> vector<8x256xf32>
    %c0_4 = arith.constant 0 : index
    %c0_5 = arith.constant 0 : index
    %4 = vector.load %arg3[%c0_4, %c0_5] : memref<8x1xf32, #tpu.memory_space<vmem>>, vector<8x1xf32>
    %5 = vector.broadcast %4 : vector<8x1xf32> to vector<8x256xf32>
    %6 = arith.addf %3, %5 : vector<8x256xf32>
    %cst_6 = arith.constant 0.000000e+00 : f32
    %cst_7 = arith.constant 6.000000e+00 : f32
    %7 = vector.broadcast %cst_6 : f32 to vector<8x256xf32>
    %8 = arith.maximumf %7, %6 : vector<8x256xf32>
    %9 = vector.broadcast %cst_7 : f32 to vector<8x256xf32>
    %10 = arith.minimumf %9, %8 : vector<8x256xf32>
    %11 = tpu.iota {dimensions = array<i32: 1>} : vector<8x256xi32>
    %c16_i32 = arith.constant 16 : i32
    %c0_i32 = arith.constant 0 : i32
    %12 = arith.cmpi eq, %c16_i32, %c0_i32 : i32
    %c1_i32 = arith.constant 1 : i32
    %13 = arith.select %12, %c1_i32, %c16_i32 : i32
    %14 = vector.broadcast %13 : i32 to vector<8x256xi32>
    %15 = arith.remsi %11, %14 : vector<8x256xi32>
    %c0_i32_8 = arith.constant 0 : i32
    %16 = vector.broadcast %c0_i32_8 : i32 to vector<8x256xi32>
    %17 = arith.cmpi ne, %15, %16 : vector<8x256xi32>
    %c0_i32_9 = arith.constant 0 : i32
    %18 = vector.broadcast %c0_i32_9 : i32 to vector<8x256xi32>
    %19 = arith.cmpi slt, %15, %18 : vector<8x256xi32>
    %c0_i32_10 = arith.constant 0 : i32
    %20 = arith.cmpi slt, %13, %c0_i32_10 : i32
    %21 = vector.broadcast %20 : i1 to vector<8x256xi1>
    %22 = vector.broadcast %21 : vector<8x256xi1> to vector<8x256xi1>
    %23 = arith.xori %19, %22 : vector<8x256xi1>
    %24 = arith.andi %23, %17 : vector<8x256xi1>
    %25 = vector.broadcast %13 : i32 to vector<8x256xi32>
    %26 = arith.addi %15, %25 : vector<8x256xi32>
    %27 = arith.select %24, %26, %15 : vector<8x256xi1>, vector<8x256xi32>
    %c1_i32_11 = arith.constant 1 : i32
    %28 = tpu.dynamic_rotate %10 by %c1_i32_11 dim 1 : vector<8x256xf32>, i32 -> vector<8x256xf32>
    %c1_i32_12 = arith.constant 1 : i32
    %29 = tpu.dynamic_rotate %27 by %c1_i32_12 dim 1 : vector<8x256xi32>, i32 -> vector<8x256xi32>
    %c255_i32 = arith.constant 255 : i32
    %30 = tpu.dynamic_rotate %10 by %c255_i32 dim 1 : vector<8x256xf32>, i32 -> vector<8x256xf32>
    %c255_i32_13 = arith.constant 255 : i32
    %31 = tpu.dynamic_rotate %27 by %c255_i32_13 dim 1 : vector<8x256xi32>, i32 -> vector<8x256xi32>
    %c1_i32_14 = arith.constant 1 : i32
    %32 = vector.broadcast %c1_i32_14 : i32 to vector<8x256xi32>
    %33 = arith.subi %27, %32 : vector<8x256xi32>
    %34 = arith.cmpi eq, %29, %33 : vector<8x256xi32>
    %cst_15 = arith.constant 0.000000e+00 : f32
    %35 = vector.broadcast %cst_15 : f32 to vector<8x256xf32>
    %36 = arith.select %34, %28, %35 : vector<8x256xi1>, vector<8x256xf32>
    %c1_i32_16 = arith.constant 1 : i32
    %37 = vector.broadcast %c1_i32_16 : i32 to vector<8x256xi32>
    %38 = arith.subi %27, %37 : vector<8x256xi32>
    %39 = arith.cmpi eq, %31, %38 : vector<8x256xi32>
    %cst_17 = arith.constant 0.000000e+00 : f32
    %40 = vector.broadcast %cst_17 : f32 to vector<8x256xf32>
    %41 = arith.select %39, %30, %40 : vector<8x256xi1>, vector<8x256xf32>
    %42 = arith.addf %36, %41 : vector<8x256xf32>
    %c1_i32_18 = arith.constant 1 : i32
    %43 = vector.broadcast %c1_i32_18 : i32 to vector<8x256xi32>
    %44 = arith.addi %27, %43 : vector<8x256xi32>
    %45 = arith.cmpi eq, %29, %44 : vector<8x256xi32>
    %cst_19 = arith.constant 0.000000e+00 : f32
    %46 = vector.broadcast %cst_19 : f32 to vector<8x256xf32>
    %47 = arith.select %45, %28, %46 : vector<8x256xi1>, vector<8x256xf32>
    %c1_i32_20 = arith.constant 1 : i32
    %48 = vector.broadcast %c1_i32_20 : i32 to vector<8x256xi32>
    %49 = arith.addi %27, %48 : vector<8x256xi32>
    %50 = arith.cmpi eq, %31, %49 : vector<8x256xi32>
    %cst_21 = arith.constant 0.000000e+00 : f32
    %51 = vector.broadcast %cst_21 : f32 to vector<8x256xf32>
    %52 = arith.select %50, %30, %51 : vector<8x256xi1>, vector<8x256xf32>
    %53 = arith.addf %47, %52 : vector<8x256xf32>
    %c0_22 = arith.constant 0 : index
    %c0_23 = arith.constant 0 : index
    %54 = vector.load %arg4[%c0_22, %c0_23] : memref<8x3xf32, #tpu.memory_space<vmem>>, vector<8x1xf32>
    %55 = vector.broadcast %54 : vector<8x1xf32> to vector<8x256xf32>
    %56 = arith.mulf %42, %55 : vector<8x256xf32>
    %c0_24 = arith.constant 0 : index
    %c1 = arith.constant 1 : index
    %57 = vector.load %arg4[%c0_24, %c1] : memref<8x3xf32, #tpu.memory_space<vmem>>, vector<8x1xf32>
    %58 = vector.broadcast %57 : vector<8x1xf32> to vector<8x256xf32>
    %59 = arith.mulf %10, %58 : vector<8x256xf32>
    %60 = arith.addf %56, %59 : vector<8x256xf32>
    %c0_25 = arith.constant 0 : index
    %c2 = arith.constant 2 : index
    %61 = vector.load %arg4[%c0_25, %c2] : memref<8x3xf32, #tpu.memory_space<vmem>>, vector<8x1xf32>
    %62 = vector.broadcast %61 : vector<8x1xf32> to vector<8x256xf32>
    %63 = arith.mulf %53, %62 : vector<8x256xf32>
    %64 = arith.addf %60, %63 : vector<8x256xf32>
    %c0_26 = arith.constant 0 : index
    %c0_27 = arith.constant 0 : index
    %65 = vector.load %arg5[%c0_26, %c0_27] : memref<8x1xf32, #tpu.memory_space<vmem>>, vector<8x1xf32>
    %66 = vector.broadcast %65 : vector<8x1xf32> to vector<8x256xf32>
    %67 = arith.addf %64, %66 : vector<8x256xf32>
    %cst_28 = arith.constant 0.000000e+00 : f32
    %cst_29 = arith.constant 6.000000e+00 : f32
    %68 = vector.broadcast %cst_28 : f32 to vector<8x256xf32>
    %69 = arith.maximumf %68, %67 : vector<8x256xf32>
    %70 = vector.broadcast %cst_29 : f32 to vector<8x256xf32>
    %71 = arith.minimumf %70, %69 : vector<8x256xf32>
    %c0_30 = arith.constant 0 : index
    %c0_31 = arith.constant 0 : index
    %72 = vector.load %arg6[%c0_30, %c0_31] : memref<4x8xf32, #tpu.memory_space<vmem>>, vector<4x8xf32>
    %cst_32 = arith.constant dense<0.000000e+00> : vector<4x256xf32>
    %73 = tpu.matmul %72, %71, %cst_32 {dimension_numbers = #tpu.dot_dimension_numbers<[1], [0], [0], [1], [0, 0, 1, 1], [], []>} : vector<4x8xf32>, vector<8x256xf32>, vector<4x256xf32> -> vector<4x256xf32>
    %c0_33 = arith.constant 0 : index
    %c0_34 = arith.constant 0 : index
    %74 = vector.load %arg7[%c0_33, %c0_34] : memref<4x1xf32, #tpu.memory_space<vmem>>, vector<4x1xf32>
    %75 = vector.broadcast %74 : vector<4x1xf32> to vector<4x256xf32>
    %76 = arith.addf %73, %75 : vector<4x256xf32>
    %77 = arith.addf %76, %1 : vector<4x256xf32>
    %c0_35 = arith.constant 0 : index
    %c0_36 = arith.constant 0 : index
    %c0_37 = arith.constant 0 : index
    %78 = vector.load %arg8[%c0_35, %c0_36, %c0_37] : memref<1x4x256xf32, #tpu.memory_space<vmem>>, vector<1x4x256xf32>
    %79 = vector.shape_cast %78 : vector<1x4x256xf32> to vector<4x256xf32>
    %80 = vector.shape_cast %77 : vector<4x256xf32> to vector<1x4x256xf32>
    tpu.vector_store %arg8[%c0_35, %c0_36, %c0_37], %80 {strides = array<i32>} : memref<1x4x256xf32, #tpu.memory_space<vmem>>, vector<1x4x256xf32>,
    return
  }
  func.func @transform_0(%arg0: i32) -> (i32, i32, i32) {
    %c0_i32 = arith.constant 0 : i32
    %c0_i32_0 = arith.constant 0 : i32
    %c0_i32_1 = arith.constant 0 : i32
    return %arg0, %c0_i32, %c0_i32_0 : i32, i32, i32
  }
  func.func @transform_1(%arg0: i32) -> (i32, i32) {
    %c0_i32 = arith.constant 0 : i32
    %c0_i32_0 = arith.constant 0 : i32
    %c0_i32_1 = arith.constant 0 : i32
    return %c0_i32, %c0_i32_0 : i32, i32
  }
  func.func @transform_2(%arg0: i32) -> (i32, i32) {
    %c0_i32 = arith.constant 0 : i32
    %c0_i32_0 = arith.constant 0 : i32
    %c0_i32_1 = arith.constant 0 : i32
    return %c0_i32, %c0_i32_0 : i32, i32
  }
  func.func @transform_3(%arg0: i32) -> (i32, i32) {
    %c0_i32 = arith.constant 0 : i32
    %c0_i32_0 = arith.constant 0 : i32
    %c0_i32_1 = arith.constant 0 : i32
    return %c0_i32, %c0_i32_0 : i32, i32
  }
  func.func @transform_4(%arg0: i32) -> (i32, i32) {
    %c0_i32 = arith.constant 0 : i32
    %c0_i32_0 = arith.constant 0 : i32
    %c0_i32_1 = arith.constant 0 : i32
    return %c0_i32, %c0_i32_0 : i32, i32
  }
  func.func @transform_5(%arg0: i32) -> (i32, i32) {
    %c0_i32 = arith.constant 0 : i32
    %c0_i32_0 = arith.constant 0 : i32
    %c0_i32_1 = arith.constant 0 : i32
    return %c0_i32, %c0_i32_0 : i32, i32
  }
  func.func @transform_6(%arg0: i32) -> (i32, i32) {
    %c0_i32 = arith.constant 0 : i32
    %c0_i32_0 = arith.constant 0 : i32
    %c0_i32_1 = arith.constant 0 : i32
    return %c0_i32, %c0_i32_0 : i32, i32
  }
  func.func @transform_7(%arg0: i32) -> (i32, i32, i32) {
    %c0_i32 = arith.constant 0 : i32
    %c0_i32_0 = arith.constant 0 : i32
    %c0_i32_1 = arith.constant 0 : i32
    return %arg0, %c0_i32, %c0_i32_0 : i32, i32, i32
  }
}

</mosaic_0001>

<bundles_post_ra>
// kernel: tpu_custom_call.1
= control target key start
LH: loop header
LB: loop body
LE: loop exit
PB: predicated region body
PF: predicated region fallthrough
CT: control target
= control target key end

     0   :  { %12 = vsyncpa [#allocation3], 0  ;;  %s977_s0 = inlined_call_operand.vmem [shape: f32[2,4,256], index: 0, kind: input, shape index: {}]   ;;  %s978_s1 = inlined_call_operand.vmem [shape: f32[8,4], index: 1, kind: input, shape index: {}]   ;;  %s979_s2 = inlined_call_operand.vmem [shape: f32[8,1], index: 2, kind: input, shape index: {}]   ;;  %s980_s3 = inlined_call_operand.vmem [shape: f32[8,3], index: 3, kind: input, shape index: {}]   ;;  %s981_s4 = inlined_call_operand.vmem [shape: f32[8,1], index: 4, kind: input, shape index: {}]   ;;  %s982_s5 = inlined_call_operand.vmem [shape: f32[4,8], index: 5, kind: input, shape index: {}]   ;;  %s983_s6 = inlined_call_operand.vmem [shape: f32[4,1], index: 6, kind: input, shape index: {}]   ;;  %s984_s7 = inlined_call_operand.hbm [shape: f32[2,4,256], index: 7, kind: output, shape index: {}]  }
   0x1   :  { %14 = vsyncpa [#allocation3 + $0x1], 0  ;;  %s829_s24 = smov 0   ;;  %s831_s25 = smov 0  }
   0x2   :  { %s833_s26 = smov 0   ;;  %s835_s27 = smov 0  }
   0x3 LB: > { %s850_s28 = sadd.s32 4294967295, %s780_s27   ;;  %s648_s29 = sadd.s32 4294967294, %s780_s27   ;;  %s780_s27 = sphi %s835_s27, %s990_s27   ;;  %s776_s26 = sphi %s833_s26, %s989_s26   ;;  %s772_s25 = sphi %s831_s25, %s988_s25   ;;  %s768_s24 = sphi %s829_s24, %s987_s24  }
   0x4   : > { %s854_s30 = sadd.s32 1, %s780_s27   ;;  %s179_s8 = sadd.s32 1, %s776_s26 }
   0x5   : > { %s176_s9 = ssub.s32 %s780_s27, %s854_s30  ;;  %p189_p0 = scmp.ne.s32.totalorder %s776_s26, %s772_s25 }
   0x6   : > { %p177_p1 = scmp.eq.s32.totalorder %s176_s9, 0  ;;  %p190_p2 = scmp.eq.s32.totalorder %s850_s28, 1 }
   0x7   : > { %p195_p3 = scmp.ne.s32.totalorder %s772_s25, %s768_s24  ;;  %p196_p4 = scmp.eq.s32.totalorder %s648_s29, 1 }
   0x8   : > { %s865_s10 = scalar_select %p177_p1, %s776_s26, %s179_s8  }
   0x9   : > { %p867_p5 = por %p190_p2, %p189_p0  ;;  %p871_p6 = por %p196_p4, %p195_p3 }
   0xa   : > { %p651_p7 = scmp.ge.s32.totalorder %s780_s27, 1  ;;  %p240_p8 = scmp.lt.s32.totalorder %s780_s27, 3 }
   0xc   : > { %p241_p9 = pnand %p651_p7, %p240_p8 }
   0xd   : > { %p272_p10 = scmp.lt.s32.totalorder (!%p241_p9), %s850_s28, 1  ;;  %v782_v0 = vmov (!%p241_p9), 0.0   ;;  %v783_v1 = vmov (!%p241_p9), 0   ;;  %v279_v2 = vld [vmem:[%s979_s2] sm:$0xff] (!%p241_p9)  ;;  %v371_v3 = vlaneseq (!%p241_p9)  ;;  %v784_v5 = vmov (!%p241_p9), 1   ;;  %s785_s22 = smov (!%p241_p9), 1  }
   0xe   : > { %244 = sbr.rel (%p241_p9) target bundleno = 625 (0x271), region = 48  ;;  %360 = vmatprep.mubr.f32.mxu0 (!%p241_p9), %v782_v0  ;;  %713 = vset.pattern.permute.xlu0 (!%p241_p9), %v783_v1  ;;  %v448_v4 = vld [vmem:[%s980_s3] sm:$0xff] (!%p241_p9)  ;;  %vm291_vm0 = vcmask (!%p241_p9), 1043456   ;;  %vm287_vm1 = vcmask (!%p241_p9), 31744   ;;  %v786_v13 = vmov (!%p241_p9), 2   ;;  %s787_s8 = smov (!%p241_p9), 127  }
   0xf   : > { %282 = vperm.xlu0 (!%p241_p9), %713, %v279_v2   ;;  %714 = vset.pattern.permute.xlu1 (!%p241_p9), %v784_v5  ;;  %v885_v6 = vand.u32 (!%p241_p9), 127, %v371_v3  ;;  %v278_v12 = vld [vmem:[%s978_s1] sm:$0xff] (!%p241_p9)  ;;  %vm491_vm12 = vcmask (!%p241_p9), 64512   ;;  %s667_s20 = sshll.u32 (!%p241_p9), %s850_s28, 7 }
  0x10   : > { %457 = vperm.xlu1 (!%p241_p9), %714, %v448_v4   ;;  %559 = vmatprep.mubr.f32.mxu1 (!%p241_p9), %v782_v0  ;;  %v472_v23 = vld [vmem:[%s981_s4] sm:$0xff] (!%p241_p9) }
  0x11   : > { %v891_v7 = vand.u32 (!%p241_p9), 15, %v885_v6  ;;  %v373_v8 = vadd.s32 (!%p241_p9), 128, %v885_v6  ;;  %v485_v24 = vld [vmem:[%s983_s6] sm:$0xf] (!%p241_p9)  ;;  %vm402_vm2 = vcmp.lt.s32.totalorder (!%p241_p9), %v885_v6, 1  ;;  %vm415_vm3 = vcmp.lt.s32.totalorder (!%p241_p9), %v885_v6, 127 }
  0x13   : > { %451 = vperm.xlu0 (!%p241_p9), %713, %v448_v4   ;;  %v385_v11 = vand.u32 (!%p241_p9), 15, %v373_v8  ;;  %v658_v33 = vadd.s32 (!%p241_p9), 4294967295, %v891_v7  ;;  %v436_v50 = vadd.s32 (!%p241_p9), 1, %v891_v7 }
  0x14   : > { %405 = vrot.lane.b32.xlu1 (!%p241_p9), %v891_v7, %s785_s22 }
  0x15   : > { %s273_s15 = scalar_select %p272_p10, %s850_s28, 1  ;;  %715 = vset.pattern.permute.xlu1 %v786_v13  ;;  %v659_v34 = vadd.s32 4294967295, %v385_v11  ;;  %v437_v51 = vadd.s32 1, %v385_v11 }
  0x16   : > { %s788_s28 = smov [#allocation2]  }
  0x17   : > { %s666_s18 = sshll.u32 %s273_s15, 3  ;;  %407 = vrot.lane.b32.xlu0 %v385_v11, %s785_s22  ;;  %s722_s14 = sshll.u32 %s788_s28, 4  ;;  %s723_s14 = int_to_ptr.vmem [resolvable:$false] %s722_s14 }
  0x18   : > { %s276_s21 = scalar_lea.vmem %s977_s0, %s666_s18  ;;  %418 = vrot.lane.b32.xlu1 %v891_v7, %s787_s8  ;;  %s269_s18 = sand.u32 1, %s772_s25  }
  0x19   : > { %v894_v9 = vld [vmem:[%s276_s21] sm:$0xff]  ;;  %s652_s19 = sshll.u32 %s269_s18, 3  ;;  %s575_s9 = scalar_lea.sflag [#allocation3], %s269_s18 }
  0x1a   : > { %v898_v10 = vcombine.high %v894_v9, %v894_v9  ;;  %s271_s21 = scalar_lea.vmem [#allocation2], %s652_s19  ;;  %s724_s15 = scalar_lea.vmem %s723_s14, 256 }
  0x1b   : > { %420 = vrot.lane.b32.xlu0 %v385_v11, %s787_s8 }
  0x1c   : > { %655 = vmatprep.subr.msk.mxu0 %vm291_vm0, %v898_v10  ;;  %465 = vperm.xlu1 %715, %v448_v4  }
  0x1d   : > { %656 = vmatpush1.msk.msra.mxu0 %vm291_vm0, %v894_v9 }
  0x1e   : > { %657 = vmatmul.mubr.msk.f32.vlgmr.msra.gmra.mrb[0].mxu0 %vm287_vm1, %v278_v12 }
  0x20   : > { %716 = vset.pattern.permute.xlu1 %v783_v1 }
  0x8e   : > { %v283_v14 = vpop.permute.xlu0 %282 }
  0x8f   : > { %v458_v25 = vpop.permute.xlu1 %457 }
  0x92   : > { %v452_v27 = vpop.permute.xlu0 %451 }
  0x93   : > { %v406_v26 = vpop.permute.xlu1 %405 }
  0x96   : > { %v408_v28 = vpop.permute.xlu0 %407 }
  0x97   : > { %v419_v29 = vpop.permute.xlu1 %418  ;;  %v409_v36 = vsel %vm402_vm2, %v406_v26, %v408_v28  ;;  %v410_v37 = vsel %vm402_vm2, %v408_v28, %v406_v26 }
  0x98   : > { %vm426_vm4 = vcmp.eq.s32.totalorder %v410_v37, %v658_v33  ;;  %vm427_vm5 = vcmp.eq.s32.totalorder %v409_v36, %v659_v34  ;;  %vm438_vm10 = vcmp.eq.s32.totalorder %v410_v37, %v436_v50  ;;  %vm439_vm11 = vcmp.eq.s32.totalorder %v409_v36, %v437_v51 }
  0x9a   : > { %v421_v31 = vpop.permute.xlu0 %420 }
  0x9b   : > { %v466_v30 = vpop.permute.xlu1 %465  ;;  %v422_v38 = vsel %vm415_vm3, %v419_v29, %v421_v31  ;;  %v423_v39 = vsel %vm415_vm3, %v421_v31, %v419_v29 }
  0x9c   : > { %vm430_vm6 = vcmp.eq.s32.totalorder %v422_v38, %v658_v33  ;;  %vm431_vm7 = vcmp.eq.s32.totalorder %v423_v39, %v659_v34  ;;  %vm442_vm8 = vcmp.eq.s32.totalorder %v422_v38, %v436_v50  ;;  %vm443_vm9 = vcmp.eq.s32.totalorder %v423_v39, %v437_v51 }
  0xf1   : > { %v362_v15 = vpop.f32.mrb[0].mxu0 }
  0xf2   : > { %v363_v16 = vadd.f32 %v362_v15, %v283_v14  ;;  %v364_v17 = vpop.f32.mrb[1].mxu0  ;;  %v484_v15 = vld [vmem:[%s982_s5] sm:$0xf] }
  0xf3   : > { %v365_v18 = vadd.f32 %v364_v17, %v283_v14 }
  0xf4   : > { %v367_v19 = vmax.f32 %v363_v16, 0.0 }
  0xf5   : > { %v368_v20 = vmax.f32 %v365_v18, 0.0 }
  0xf6   : > { %v369_v21 = vmin.f32 %v367_v19, 6.0 }
  0xf7   : > { %v370_v22 = vmin.f32 %v368_v20, 6.0 }
  0xf8   : > { %398 = vrot.lane.b32.xlu0 %v369_v21, %s785_s22  ;;  %v460_v60 = vmul.f32 %v458_v25, %v369_v21 }
  0xf9   : > { %400 = vrot.lane.b32.xlu1 %v370_v22, %s785_s22  ;;  %v461_v61 = vmul.f32 %v458_v25, %v370_v22  ;;  %s589_s22 = sshll.u32 %s271_s21, 4  ;;  %s937_s22 = int_to_ptr.vmem [resolvable:$true] %s589_s22 }
  0xfa   : > { %s718_s13 = scalar_lea.vmem %s937_s22, 128  ;;  %p725_p0 = scmp.lt.s32.totalorder %s937_s22, %s723_s14 }
  0xfb   : > { %p719_p11 = scmp.ne.s32.totalorder %s937_s22, %s718_s13  ;;  %p726_p1 = scmp.lt.s32.totalorder %s724_s15, %s718_s13 }
  0xfc   : > { %411 = vrot.lane.b32.xlu0 %v369_v21, %s787_s8 }
  0xfd   : > { %413 = vrot.lane.b32.xlu1 %v370_v22, %s787_s8  ;;  %s935_s8 = scalar_lea.hbm %s984_s7, %s667_s20  ;;  %p720_p12 = pnand %p719_p11, %p867_p5 }
  0xfe   : > { %p727_p2 = por %p726_p1, %p725_p0 }
  0xff   : > { %p721_p13 = pneg %p720_p12 }
 0x100   : > { %475 = vperm.xlu0 %713, %v472_v23  }
 0x101   : > { %488 = vperm.xlu1 %716, %v485_v24   ;;  %p728_p3 = pnand %p727_p2, %p721_p13 }
 0x16a   : > { %v399_v32 = vpop.permute.xlu0 %398 }
 0x16b   : > { %v401_v35 = vpop.permute.xlu1 %400 }
 0x16c   : > { %v403_v40 = vsel %vm402_vm2, %v399_v32, %v401_v35  ;;  %v404_v41 = vsel %vm402_vm2, %v401_v35, %v399_v32 }
 0x16d   : > { %v428_v46 = vsel %vm426_vm4, %v404_v41, 0.0  ;;  %v429_v47 = vsel %vm427_vm5, %v403_v40, 0.0  ;;  %v440_v58 = vsel %vm438_vm10, %v404_v41, 0.0  ;;  %v441_v59 = vsel %vm439_vm11, %v403_v40, 0.0 }
 0x16e   : > { %v412_v42 = vpop.permute.xlu0 %411 }
 0x16f   : > { %v414_v43 = vpop.permute.xlu1 %413 }
 0x170   : > { %v416_v44 = vsel %vm415_vm3, %v412_v42, %v414_v43  ;;  %v417_v45 = vsel %vm415_vm3, %v414_v43, %v412_v42 }
 0x171   : > { %v432_v48 = vsel %vm430_vm6, %v416_v44, 0.0  ;;  %v433_v49 = vsel %vm431_vm7, %v417_v45, 0.0  ;;  %v444_v54 = vsel %vm442_vm8, %v416_v44, 0.0  ;;  %v445_v55 = vsel %vm443_vm9, %v417_v45, 0.0 }
 0x172   : > { %v434_v52 = vadd.f32 %v432_v48, %v428_v46  ;;  %v435_v53 = vadd.f32 %v433_v49, %v429_v47  ;;  %v446_v62 = vadd.f32 %v444_v54, %v440_v58  ;;  %v447_v63 = vadd.f32 %v445_v55, %v441_v59 }
 0x174   : > { %v454_v56 = vmul.f32 %v452_v27, %v434_v52  ;;  %v455_v57 = vmul.f32 %v452_v27, %v435_v53  ;;  %v468_v2 = vmul.f32 %v466_v30, %v446_v62  ;;  %v469_v3 = vmul.f32 %v466_v30, %v447_v63 }
 0x176   : > { %v463_v0 = vadd.f32 %v461_v61, %v455_v57  ;;  %v462_v1 = vadd.f32 %v460_v60, %v454_v56 }
 0x178   : > { %v471_v4 = vadd.f32 %v469_v3, %v463_v0  ;;  %v470_v5 = vadd.f32 %v468_v2, %v462_v1 }
 0x17f   : > { %v476_v6 = vpop.permute.xlu0 %475 }
 0x180   : > { %v478_v7 = vadd.f32 %v476_v6, %v470_v5  ;;  %v479_v8 = vadd.f32 %v476_v6, %v471_v4  ;;  %v489_v16 = vpop.permute.xlu1 %488 }
 0x182   : > { %v480_v11 = vmax.f32 %v478_v7, 0.0  ;;  %v481_v12 = vmax.f32 %v479_v8, 0.0 }
 0x184   : > { %v483_v13 = vmin.f32 %v481_v12, 6.0  ;;  %v482_v14 = vmin.f32 %v480_v11, 6.0 }
 0x186   : > { %495 = vmatprep.subr.mxu1 %v483_v13 }
 0x187   : > { %496 = vmatpush1.msra.mxu1 %v482_v14 }
 0x188   : > { %660 = vmatmul.mubr.msk.f32.vlgmr.msra.gmra.mrb[0].mxu1 %vm491_vm12, %v484_v15 }
 0x25b   : > { %v561_v17 = vpop.f32.mrb[0].mxu1 }
 0x25c   : > { %v562_v18 = vadd.f32 %v561_v17, %v489_v16  ;;  %v563_v19 = vpop.f32.mrb[1].mxu1 }
 0x25d   : > { %v564_v20 = vadd.f32 %v563_v19, %v489_v16 }
 0x25e   : > { %v567_v21 = vadd.f32 %v562_v18, %v894_v9 }
 0x25f   : > { %v568_v22 = vadd.f32 %v564_v20, %v898_v10 }
 0x261   : > { %v571_v23 = vcombine.low %v567_v21, %v568_v22 }
 0x263   : > { %573 = vst [vmem:[%s271_s21] sm:$0xff] %v571_v23 }
 0x264   : > { %731 = shalt.err (!%p728_p3)
}
 0x265   : > { %s732_s16 = scalar_lea.hbm %s935_s8, 128  ;;  %s736_s19 = scalar_lea.hbm %s984_s7, 256 }
 0x266   : > { %p733_p4 = scmp.ne.s32.totalorder %s935_s8, %s732_s16  ;;  %p737_p9 = scmp.lt.u32.totalorder %s935_s8, %s984_s7 }
 0x267   : > { %p738_p10 = scmp.lt.u32.totalorder %s736_s19, %s732_s16  ;;  %p740_p12 = scmp.lt.u32.totalorder %s732_s16, %s935_s8 }
 0x268   : > { %p734_p7 = pnand %p733_p4, %p867_p5 }
 0x269   : > { %p739_p11 = por %p738_p10, %p737_p9 }
 0x26a   : > { %p735_p8 = pneg %p734_p7 }
 0x26b   : > { %p741_p13 = por %p740_p12, %p739_p11 }
 0x26d   : > { %p742_p0 = pnand %p741_p13, %p735_p8 }
 0x26f   : > { %745 = shalt.err (!%p742_p0)
}
 0x270   : > { %668 = dma.vmem_to_hbm [thread:$0]  (%p867_p5), %s937_s22, 128, %s935_s8, %s575_s9  }
 0x271 PF: > { %p674_p1 = scmp.ge.s32.totalorder %s780_s27, 2  ;;  %s601_s23 = sand.u32 1, %s768_s24  }
 0x272   : > { %s602_s29 = scalar_lea.sflag [#allocation3], %s601_s23 }
 0x273   : > { %p671_p2 = pnand %p674_p1, %p871_p6 }
 0x275   : > { %763 = dma.done.wait (!%p671_p2), %s602_s29, 128  }
 0x276   : > { %765 = vsyncadd (!%p671_p2), %s602_s29, 4294967168  ;;  %p17_p3 = scmp.ge.s32.totalorder %s854_s30, 4   ;;  %s987_s24 = smov %s772_s25 }
 0x277   : > { %s988_s25 = smov %s776_s26  ;;  %s989_s26 = smov %s865_s10 }
 0x278   : > { %s990_s27 = smov %s854_s30  ;;  %19 = sbr.rel (!%p17_p3) target bundleno = 3 (0x3), region = 83 }
 0x27f   :  { %607 = vsyncpa [#allocation3], 1 }
 0x280   :  { %609 = vsyncpa [#allocation3 + $0x1], 1 }

</bundles_post_ra>
